<compile_context>
chip_gen: v7x
topology: tpu7x:2x2x1
jax: 0.10.0
libtpu: 0.0.40
codegen_flags: <defaults>
</compile_context>

<pallas_src>
import jax
import jax.numpy as jnp
from jax import lax
from jax.experimental import pallas as pl
from jax.experimental.pallas import tpu as pltpu

NUM_LAYERS = 13      # embeddings + 12 transformer layers
NUM_DROPOUTS = 5     # inference-mode (identity) dropout -> 5-way average == 1 fc


def head_kernel(cls_ref, x_ref, seg_ref, atten_ref, w1_ref, w2_ref, b_ref,
                out_ref):
    # ---- sequence sum of last_hidden on the MXU --------------------------
    # seg (tb, tb*S) is a 0/1 block-diagonal matrix, x is the flattened
    # (tb*S, H) slab of this batch tile; the matmul yields the per-example
    # sum over the sequence with f32 accumulation.
    ssum = lax.dot_general(
        seg_ref[...], x_ref[...],
        dimension_numbers=(((1,), (0,)), ((), ())),
        preferred_element_type=jnp.float32)                          # (tb, H)

    # ---- layer-attention-weighted [CLS] feature ---------------------------
    # atten (softmax over the 13 layers, batch-coupled) is precomputed in JAX.
    cls = cls_ref[...].astype(jnp.float32)                           # (L, tb, H)
    feature = jnp.sum(cls * atten_ref[...][:, :, None], axis=0)      # (tb, H)

    # ---- fc on the virtual concat: feature @ W1^T + mean(last) @ W2^T + b -
    # W2 is pre-scaled by 1/S, so the raw sequence sum is used directly.
    nt = (((1,), (1,)), ((), ()))          # contract on H, weights stored (C, H)
    h = lax.dot_general(feature, w1_ref[...], nt,
                        preferred_element_type=jnp.float32)
    h = h + lax.dot_general(ssum, w2_ref[...], nt,
                            preferred_element_type=jnp.float32)
    h = h + b_ref[...]
    # 5x multi-sample dropout averaged is the identity at inference.
    out_ref[...] = h.astype(out_ref.dtype)


def _pick_tb(b_padded):
    # >= 2 batch tiles whenever possible so ("parallel",) can shard across the
    # two v7x TensorCores; tb=16 keeps the 2x double-buffered (tb*S, H) bf16
    # slabs (~25 MiB at S=512, H=768) comfortably under v7x's 64 MiB VMEM.
    for t in (16, 8):
        if b_padded % t == 0 and b_padded // t >= 2:
            return t
    return 8


def neuralnet_head(all_cls, last_hidden, layer_w, fc_w_t, fc_b, *, tb=None):
    """all_cls: (13, B, H) per-layer [CLS] states; last_hidden: (B, S, H);
       layer_w: (13, 1); fc_w_t: (C, 2H) transposed fc weight; fc_b: (1, C).
       Returns logits (B, C) in float32."""
    L, B, H = all_cls.shape
    Bl, S, Hl = last_hidden.shape
    assert L == NUM_LAYERS and (B, H) == (Bl, Hl)
    C = fc_w_t.shape[0]
    assert fc_w_t.shape == (C, 2 * H) and fc_b.shape == (1, C)

    # ---- batch-global layer attention (13-way softmax) hoisted to JAX ------
    logits = jnp.sum(all_cls.astype(jnp.float32), axis=(1, 2)) * layer_w[:, 0]
    atten = jax.nn.softmax(logits).reshape(L, 1).astype(jnp.float32)   # (L, 1)

    # ---- pad batch to a multiple of 8 so all blocks stay sublane aligned ---
    Bp = -(-B // 8) * 8
    if Bp != B:
        all_cls = jnp.pad(all_cls, ((0, 0), (0, Bp - B), (0, 0)))
        last_hidden = jnp.pad(last_hidden, ((0, Bp - B), (0, 0), (0, 0)))

    if tb is None:
        tb = _pick_tb(Bp)
    assert tb % 8 == 0 and Bp % tb == 0

    # ---- free wrapper-level views and constant prep -------------------------
    x2d = last_hidden.reshape(Bp * S, H)        # row-major collapse, no copy
    # 0/1 block-diagonal segment matrix: seg[r, i] = 1 iff i // S == r.
    seg = (jnp.arange(tb * S)[None, :] // S ==
           jnp.arange(tb)[:, None]).astype(last_hidden.dtype)      # (tb, tb*S)
    w1_t = fc_w_t[:, :H].astype(jnp.float32)                       # (C, H)
    w2_t = (fc_w_t[:, H:] * (1.0 / S)).astype(jnp.float32)         # (C, H), mean folded
    bias = fc_b.astype(jnp.float32)                                # (1, C)

    # ---- explicit VMEM budget (v5e scoped default 16 MiB; v7x phys 64 MiB) -
    bytes_x = tb * S * H * x2d.dtype.itemsize
    bytes_cls = L * tb * H * all_cls.dtype.itemsize
    bytes_seg = tb * tb * S * seg.dtype.itemsize
    bytes_fixed = (2 * C * H + L + C + tb * C) * 4
    need = 2 * (bytes_x + bytes_cls + bytes_seg + bytes_fixed)
    assert need <= 60 * 1024 * 1024, (
        "batch tile too large for v7x VMEM -- lower tb")
    vmem_limit = min(64 * 1024 * 1024,
                     max(32 * 1024 * 1024, int(1.4 * need)))

    cost = pl.CostEstimate(
        flops=int(2 * Bp * S * H + 3 * L * Bp * H + 2 * 2 * H * C * Bp),
        transcendentals=0,
        bytes_accessed=int(x2d.size * x2d.dtype.itemsize
                           + all_cls.size * all_cls.dtype.itemsize
                           + seg.size * seg.dtype.itemsize
                           + 2 * C * H * 4 + Bp * C * 4),
    )

    out = pl.pallas_call(
        head_kernel,
        out_shape=jax.ShapeDtypeStruct((Bp, C), jnp.float32),
        grid_spec=pltpu.PrefetchScalarGridSpec(
            num_scalar_prefetch=0,
            grid=(Bp // tb,),
            in_specs=[
                pl.BlockSpec((L, tb, H), lambda b: (0, b, 0)),   # all_cls tile
                pl.BlockSpec((tb * S, H), lambda b: (b, 0)),     # last_hidden slab
                pl.BlockSpec((tb, tb * S), lambda b: (0, 0)),    # segment matrix
                pl.BlockSpec((L, 1), lambda b: (0, 0)),          # softmax atten
                pl.BlockSpec((C, H), lambda b: (0, 0)),          # W1^T
                pl.BlockSpec((C, H), lambda b: (0, 0)),          # W2^T / S
                pl.BlockSpec((1, C), lambda b: (0, 0)),          # bias
            ],
            out_specs=pl.BlockSpec((tb, C), lambda b: (b, 0)),
        ),
        compiler_params=pltpu.CompilerParams(
            dimension_semantics=("parallel",),
            vmem_limit_bytes=vmem_limit),
        cost_estimate=cost,
    )(all_cls, x2d, seg, atten, w1_t, w2_t, bias)

    return out[:B] if Bp != B else out


def reference_head(all_cls, last_hidden, layer_w, fc_w_t, fc_b):
    """Pure-JAX reference mirroring the PyTorch forward (inference dropout)."""
    cls = all_cls.astype(jnp.float32)
    logits = jnp.sum(cls, axis=(1, 2)) * layer_w[:, 0]
    atten = jax.nn.softmax(logits)
    feature = jnp.sum(cls * atten[:, None, None], axis=0)
    f = jnp.mean(last_hidden.astype(jnp.float32), axis=1)
    feat = jnp.concatenate([feature, f], axis=1)
    h = feat @ fc_w_t.T + fc_b
    return h  # the 5x inference-dropout average is the identity


if __name__ == "__main__":
    # Small synthetic shapes consistent with the module structure.
    B, S, H, C = 16, 64, 256, 2     # real model: B=256, S=512, H=768, num_class=2
    key = jax.random.PRNGKey(0)
    k1, k2, k3, k4, k5 = jax.random.split(key, 5)

    # TODO(synk): BertModel.from_pretrained backbone is not translated; its 13
    # hidden states' [CLS] vectors and last_hidden are synthesized here (bf16,
    # as a bf16 backbone would emit).
    all_hidden_cls = jax.random.normal(
        k1, (NUM_LAYERS, B, H), jnp.float32).astype(jnp.bfloat16)
    last_hidden = jax.random.normal(
        k2, (B, S, H), jnp.float32).astype(jnp.bfloat16)

    # Parameters (shapes as in the module):
    #   self.weights = nn.Parameter(torch.rand(13, 1))
    layer_w = jax.random.uniform(k3, (NUM_LAYERS, 1), jnp.float32)
    #   self.fc = nn.Linear(hidden_size * 2, num_class)  (stored transposed (C, 2H))
    bound = 1.0 / jnp.sqrt(2.0 * H)
    fc_w_t = jax.random.uniform(k4, (C, 2 * H), jnp.float32, -bound, bound)
    fc_b = jax.random.uniform(k5, (1, C), jnp.float32, -bound, bound)

    out = neuralnet_head(all_hidden_cls, last_hidden, layer_w, fc_w_t, fc_b)
    out = jax.block_until_ready(out)

    ref = reference_head(all_hidden_cls, last_hidden, layer_w, fc_w_t, fc_b)
    assert out.shape == (B, C)
    assert jnp.allclose(out, ref, rtol=5e-3, atol=5e-3), float(
        jnp.max(jnp.abs(out - ref)))

    print("KERNEL_OK")
</pallas_src>

<mosaic_0001>
module attributes {stable_mosaic.version = 11 : i64} {
  func.func @head_kernel(%arg0: i32, %arg1: memref<13x8x256xbf16, #tpu.memory_space<vmem>>, %arg2: memref<512x256xbf16, #tpu.memory_space<vmem>>, %arg3: memref<8x512xbf16, #tpu.memory_space<vmem>>, %arg4: memref<13x1xf32, #tpu.memory_space<vmem>>, %arg5: memref<2x256xf32, #tpu.memory_space<vmem>>, %arg6: memref<2x256xf32, #tpu.memory_space<vmem>>, %arg7: memref<1x2xf32, #tpu.memory_space<vmem>>, %arg8: memref<8x2xf32, #tpu.memory_space<vmem>>) attributes {dimension_semantics = [#tpu.dimension_semantics<parallel>], iteration_bounds = array<i64: 2>, scalar_prefetch = 0 : i64, scratch_operands = 0 : i64, tpu.core_type = #tpu.core_type<tc>, window_params = [{transform_indices = @transform_0, window_bounds = array<i64: 13, 8, 256>}, {transform_indices = @transform_1, window_bounds = array<i64: 512, 256>}, {pipeline_mode = #tpu.pipeline_mode<synchronous>, transform_indices = @transform_2, window_bounds = array<i64: 8, 512>}, {pipeline_mode = #tpu.pipeline_mode<synchronous>, transform_indices = @transform_3, window_bounds = array<i64: 13, 1>}, {pipeline_mode = #tpu.pipeline_mode<synchronous>, transform_indices = @transform_4, window_bounds = array<i64: 2, 256>}, {pipeline_mode = #tpu.pipeline_mode<synchronous>, transform_indices = @transform_5, window_bounds = array<i64: 2, 256>}, {pipeline_mode = #tpu.pipeline_mode<synchronous>, transform_indices = @transform_6, window_bounds = array<i64: 1, 2>}, {transform_indices = @transform_7, window_bounds = array<i64: 8, 2>}]} {
    %c0 = arith.constant 0 : index
    %c0_0 = arith.constant 0 : index
    %0 = vector.load %arg3[%c0, %c0_0] : memref<8x512xbf16, #tpu.memory_space<vmem>>, vector<8x512xbf16>
    %c0_1 = arith.constant 0 : index
    %c0_2 = arith.constant 0 : index
    %1 = vector.load %arg2[%c0_1, %c0_2] : memref<512x256xbf16, #tpu.memory_space<vmem>>, vector<512x256xbf16>
    %cst = arith.constant dense<0.000000e+00> : vector<8x256xf32>
    %2 = tpu.matmul %0, %1, %cst {dimension_numbers = #tpu.dot_dimension_numbers<[1], [0], [0], [1], [0, 0, 1, 1], [], []>} : vector<8x512xbf16>, vector<512x256xbf16>, vector<8x256xf32> -> vector<8x256xf32>
    %c0_3 = arith.constant 0 : index
    %c0_4 = arith.constant 0 : index
    %c0_5 = arith.constant 0 : index
    %3 = vector.load %arg1[%c0_3, %c0_4, %c0_5] : memref<13x8x256xbf16, #tpu.memory_space<vmem>>, vector<13x8x256xbf16>
    %4 = arith.extf %3 : vector<13x8x256xbf16> to vector<13x8x256xf32>
    %c0_6 = arith.constant 0 : index
    %c0_7 = arith.constant 0 : index
    %5 = vector.load %arg4[%c0_6, %c0_7] : memref<13x1xf32, #tpu.memory_space<vmem>>, vector<13x1xf32>
    %6 = vector.shape_cast %5 : vector<13x1xf32> to vector<13x1x1xf32>
    %7 = vector.broadcast %6 : vector<13x1x1xf32> to vector<13x8x256xf32>
    %8 = arith.mulf %4, %7 : vector<13x8x256xf32>
    %cst_8 = arith.constant dense<0.000000e+00> : vector<8x256xf32>
    %9 = vector.multi_reduction <add>, %8, %cst_8 [0] : vector<13x8x256xf32> to vector<8x256xf32>
    %c0_9 = arith.constant 0 : index
    %c0_10 = arith.constant 0 : index
    %10 = vector.load %arg5[%c0_9, %c0_10] : memref<2x256xf32, #tpu.memory_space<vmem>>, vector<2x256xf32>
    %cst_11 = arith.constant dense<0.000000e+00> : vector<8x2xf32>
    %11 = tpu.matmul %9, %10, %cst_11 {dimension_numbers = #tpu.dot_dimension_numbers<[1], [1], [0], [0], [0, 0, 1, 0], [], []>} : vector<8x256xf32>, vector<2x256xf32>, vector<8x2xf32> -> vector<8x2xf32>
    %c0_12 = arith.constant 0 : index
    %c0_13 = arith.constant 0 : index
    %12 = vector.load %arg6[%c0_12, %c0_13] : memref<2x256xf32, #tpu.memory_space<vmem>>, vector<2x256xf32>
    %cst_14 = arith.constant dense<0.000000e+00> : vector<8x2xf32>
    %13 = tpu.matmul %2, %12, %cst_14 {dimension_numbers = #tpu.dot_dimension_numbers<[1], [1], [0], [0], [0, 0, 1, 0], [], []>} : vector<8x256xf32>, vector<2x256xf32>, vector<8x2xf32> -> vector<8x2xf32>
    %14 = arith.addf %11, %13 : vector<8x2xf32>
    %c0_15 = arith.constant 0 : index
    %c0_16 = arith.constant 0 : index
    %15 = vector.load %arg7[%c0_15, %c0_16] : memref<1x2xf32, #tpu.memory_space<vmem>>, vector<1x2xf32>
    %16 = vector.broadcast %15 : vector<1x2xf32> to vector<8x2xf32>
    %17 = arith.addf %14, %16 : vector<8x2xf32>
    %c0_17 = arith.constant 0 : index
    %c0_18 = arith.constant 0 : index
    %18 = vector.load %arg8[%c0_17, %c0_18] : memref<8x2xf32, #tpu.memory_space<vmem>>, vector<8x2xf32>
    tpu.vector_store %arg8[%c0_17, %c0_18], %17 {strides = array<i32>} : memref<8x2xf32, #tpu.memory_space<vmem>>, vector<8x2xf32>,
    return
  }
  func.func @transform_0(%arg0: i32) -> (i32, i32, i32) {
    %c0_i32 = arith.constant 0 : i32
    %c0_i32_0 = arith.constant 0 : i32
    %c0_i32_1 = arith.constant 0 : i32
    return %c0_i32, %arg0, %c0_i32_0 : i32, i32, i32
  }
  func.func @transform_1(%arg0: i32) -> (i32, i32) {
    %c0_i32 = arith.constant 0 : i32
    %c0_i32_0 = arith.constant 0 : i32
    return %arg0, %c0_i32 : i32, i32
  }
  func.func @transform_2(%arg0: i32) -> (i32, i32) {
    %c0_i32 = arith.constant 0 : i32
    %c0_i32_0 = arith.constant 0 : i32
    %c0_i32_1 = arith.constant 0 : i32
    return %c0_i32, %c0_i32_0 : i32, i32
  }
  func.func @transform_3(%arg0: i32) -> (i32, i32) {
    %c0_i32 = arith.constant 0 : i32
    %c0_i32_0 = arith.constant 0 : i32
    %c0_i32_1 = arith.constant 0 : i32
    return %c0_i32, %c0_i32_0 : i32, i32
  }
  func.func @transform_4(%arg0: i32) -> (i32, i32) {
    %c0_i32 = arith.constant 0 : i32
    %c0_i32_0 = arith.constant 0 : i32
    %c0_i32_1 = arith.constant 0 : i32
    return %c0_i32, %c0_i32_0 : i32, i32
  }
  func.func @transform_5(%arg0: i32) -> (i32, i32) {
    %c0_i32 = arith.constant 0 : i32
    %c0_i32_0 = arith.constant 0 : i32
    %c0_i32_1 = arith.constant 0 : i32
    return %c0_i32, %c0_i32_0 : i32, i32
  }
  func.func @transform_6(%arg0: i32) -> (i32, i32) {
    %c0_i32 = arith.constant 0 : i32
    %c0_i32_0 = arith.constant 0 : i32
    %c0_i32_1 = arith.constant 0 : i32
    return %c0_i32, %c0_i32_0 : i32, i32
  }
  func.func @transform_7(%arg0: i32) -> (i32, i32) {
    %c0_i32 = arith.constant 0 : i32
    %c0_i32_0 = arith.constant 0 : i32
    return %arg0, %c0_i32 : i32, i32
  }
}

</mosaic_0001>

<bundles_post_ra>
// kernel: tpu_custom_call.1
= control target key start
LH: loop header
LB: loop body
LE: loop exit
PB: predicated region body
PF: predicated region fallthrough
CT: control target
= control target key end

     0   :  { %12 = vsyncpa [#allocation3], 0  ;;  %s2061_s0 = inlined_call_operand.hbm [shape: bf16[13,16,256], index: 0, kind: input, shape index: {}]   ;;  %s2062_s1 = inlined_call_operand.hbm [shape: bf16[1024,256], index: 1, kind: input, shape index: {}]   ;;  %s2063_s2 = inlined_call_operand.vmem [shape: bf16[8,512], index: 2, kind: input, shape index: {}]   ;;  %s2064_s3 = inlined_call_operand.vmem [shape: f32[13,1], index: 3, kind: input, shape index: {}]   ;;  %s2065_s4 = inlined_call_operand.vmem [shape: f32[2,256], index: 4, kind: input, shape index: {}]   ;;  %s2066_s5 = inlined_call_operand.vmem [shape: f32[2,256], index: 5, kind: input, shape index: {}]   ;;  %s2067_s6 = inlined_call_operand.vmem [shape: f32[1,2], index: 6, kind: input, shape index: {}]   ;;  %s2068_s7 = inlined_call_operand.vmem [shape: f32[16,2], index: 7, kind: output, shape index: {}]  }
   0x1   :  { %14 = vsyncpa [#allocation3 + $0x1], 0 }
   0x2   :  { %15 = vsyncpa [#allocation5], 0 }
   0x3   :  { %17 = vsyncpa [#allocation5 + $0x1], 0  ;;  %s1760_s24 = smov 0   ;;  %s1762_s25 = smov 0  }
   0x4   :  { %s1764_s26 = smov 0   ;;  %s1766_s27 = smov 0  }
   0x5 LB: > { %s1779_s28 = sadd.s32 4294967295, %s1711_s27   ;;  %s1782_s29 = sadd.s32 1, %s1711_s27   ;;  %s1711_s27 = sphi %s1766_s27, %s2077_s27   ;;  %s1707_s26 = sphi %s1764_s26, %s2076_s26   ;;  %s1703_s25 = sphi %s1762_s25, %s2075_s25   ;;  %s1699_s24 = sphi %s1760_s24, %s2074_s24  }
   0x6   : > { %s27_s30 = ssub.s32 %s1711_s27, %s1782_s29  ;;  %s30_s8 = sadd.s32 1, %s1707_s26 }
   0x7   : > { %p28_p0 = scmp.eq.s32.totalorder %s27_s30, 0  ;;  %p37_p1 = scmp.ne.s32.totalorder %s1707_s26, %s1703_s25 }
   0x8   : > { %p38_p2 = scmp.eq.s32.totalorder %s1711_s27, 0  ;;  %p43_p3 = scmp.ne.s32.totalorder %s1703_s25, %s1699_s24 }
   0x9   : > { %s1792_s9 = scalar_select %p28_p0, %s1707_s26, %s30_s8  }
   0xa   : > { %p39_p4 = por %p38_p2, %p37_p1  ;;  %p44_p5 = scmp.eq.s32.totalorder %s1779_s28, 0 }
   0xb   : > { %p1471_p6 = scmp.lt.s32.totalorder %s1711_s27, 2  ;;  %s1801_s11 = sand.u32 1, %s1707_s26  }
   0xc   : > { %p1796_p7 = por %p44_p5, %p43_p3  ;;  %s1458_s12 = smul.u32 104, %s1801_s11 }
   0xd   : > { %s1453_s13 = sshll.u32 %s1711_s27, 7  ;;  %p1805_p8 = pnand %p1471_p6, %p39_p4 }
   0xe   : > { %s2070_s10 = scalar_select %p1796_p7, 1, 0 }
   0xf   : > { %s1812_s17 = scalar_lea.hbm %s2061_s0, %s1453_s13  ;;  %s243_s18 = scalar_lea.vmem [#allocation2], %s1458_s12 }
  0x10   : > { %s250_s19 = sshll.u32 %s243_s18, 4  ;;  %s240_s20 = scalar_lea.sflag [#allocation3], %s1801_s11  ;;  %s1814_s19 = int_to_ptr.vmem [resolvable:$true] %s250_s19 }
  0x11   : > { %s1613_s21 = scalar_lea.hbm %s1812_s17, 1664  ;;  %p1615_p10 = pneg %p1805_p8 }
  0x12   : > { %p1614_p9 = scmp.ne.s32.totalorder %s1812_s17, %s1613_s21  ;;  %s1618_s24 = scalar_lea.hbm %s2061_s0, 3328 }
  0x13   : > { %p1619_p13 = scmp.lt.u32.totalorder %s1812_s17, %s2061_s0  ;;  %p1620_p0 = scmp.lt.u32.totalorder %s1618_s24, %s1613_s21 }
  0x14   : > { %p1616_p11 = pnand %p1615_p10, %p1614_p9  ;;  %p1622_p2 = scmp.lt.u32.totalorder %s1613_s21, %s1812_s17 }
  0x15   : > { %p1621_p1 = por %p1620_p0, %p1619_p13 }
  0x16   : > { %p1617_p12 = pneg %p1616_p11 }
  0x17   : > { %p1623_p3 = por %p1622_p2, %p1621_p1 }
  0x19   : > { %p1624_p4 = pnand %p1623_p3, %p1617_p12 }
  0x1b   : > { %1627 = shalt.err (!%p1624_p4)
}
  0x1c   : > { %s1628_s12 = scalar_lea.vmem %s1814_s19, 1664  ;;  %s1713_s13 = smov [#allocation2]  }
  0x1d   : > { %p1629_p5 = scmp.ne.s32.totalorder %s1814_s19, %s1628_s12  ;;  %s1633_s15 = sshll.u32 %s1713_s13, 4  ;;  %s1634_s15 = int_to_ptr.vmem [resolvable:$false] %s1633_s15 }
  0x1e   : > { %s1635_s16 = scalar_lea.vmem %s1634_s15, 3328  ;;  %p1636_p11 = scmp.lt.s32.totalorder %s1814_s19, %s1634_s15 }
  0x1f   : > { %p1631_p6 = pnand %p1629_p5, %p1615_p10  ;;  %p1637_p13 = scmp.lt.s32.totalorder %s1635_s16, %s1628_s12 }
  0x21   : > { %p1632_p9 = pneg %p1631_p6  ;;  %p1638_p0 = por %p1637_p13, %p1636_p11 }
  0x23   : > { %p1639_p1 = pnand %p1638_p0, %p1632_p9 }
  0x25   : > { %1642 = shalt.err (!%p1639_p1)
}
  0x26   : > { %s1714_s18 = smov 256   ;;  %s1715_s21 = smov 128  }
  0x27   : > { %s1716_s22 = smov 8   ;;  %p1377_p12 = scmp.ge.s32.totalorder %s1711_s27, 1 }
  0x28   : > { %1467 = dma.hbm_to_vmem [thread:$0]  (!%p1805_p8), %s1812_s17, 1664, %s1814_s19, %s240_s20, %s1714_s18, %s1715_s21, %s1716_s22  }
  0x29   : > { %p280_p2 = scmp.lt.s32.totalorder %s1711_s27, 3  ;;  %s1373_s23 = sshll.u32 %s1801_s11, 9 }
  0x2a   : > { %s1455_s30 = sshll.u32 %s1711_s27, 13  ;;  %s264_s8 = scalar_lea.vmem [#allocation4], %s1373_s23 }
  0x2b   : > { %p1849_p3 = pnand %p1377_p12, %p280_p2  ;;  %s272_s12 = sshll.u32 %s264_s8, 4  ;;  %s1859_s12 = int_to_ptr.vmem [resolvable:$true] %s272_s12 }
  0x2c   : > { %s1857_s16 = scalar_lea.hbm %s2062_s1, %s1455_s30  ;;  %s261_s17 = scalar_lea.sflag [#allocation5], %s1801_s11 }
  0x2d   : > { %s1643_s19 = scalar_lea.hbm %s1857_s16, 8192  ;;  %s1648_s18 = scalar_lea.hbm %s2062_s1, 16384 }
  0x2e   : > { %p1644_p4 = scmp.ne.s32.totalorder %s1857_s16, %s1643_s19  ;;  %p1649_p9 = scmp.lt.u32.totalorder %s1857_s16, %s2062_s1 }
  0x2f   : > { %p1650_p11 = scmp.lt.u32.totalorder %s1648_s18, %s1643_s19  ;;  %p1652_p0 = scmp.lt.u32.totalorder %s1643_s19, %s1857_s16 }
  0x30   : > { %p1646_p5 = pnand %p1644_p4, %p1615_p10 }
  0x31   : > { %p1651_p13 = por %p1650_p11, %p1649_p9 }
  0x32   : > { %p1647_p6 = pneg %p1646_p5 }
  0x33   : > { %p1653_p1 = por %p1652_p0, %p1651_p13 }
  0x35   : > { %p1654_p12 = pnand %p1653_p1, %p1647_p6 }
  0x37   : > { %1657 = shalt.err (!%p1654_p12)
}
  0x38   : > { %s1658_s8 = scalar_lea.vmem %s1859_s12, 8192  ;;  %s1717_s13 = smov [#allocation4]  }
  0x39   : > { %p1659_p2 = scmp.ne.s32.totalorder %s1859_s12, %s1658_s8  ;;  %s1663_s15 = sshll.u32 %s1717_s13, 4  ;;  %s1664_s15 = int_to_ptr.vmem [resolvable:$false] %s1663_s15 }
  0x3a   : > { %s1665_s27 = scalar_lea.vmem %s1664_s15, 16384  ;;  %p1666_p7 = scmp.lt.s32.totalorder %s1859_s12, %s1664_s15 }
  0x3b   : > { %p1661_p4 = pnand %p1659_p2, %p1615_p10  ;;  %p1667_p9 = scmp.lt.s32.totalorder %s1665_s27, %s1658_s8 }
  0x3d   : > { %p1662_p5 = pneg %p1661_p4  ;;  %p1668_p11 = por %p1667_p9, %p1666_p7 }
  0x3f   : > { %p1669_p13 = pnand %p1668_p11, %p1662_p5 }
  0x41   : > { %1672 = shalt.err (!%p1669_p13)
}
  0x42   : > { %1470 = dma.hbm_to_vmem [thread:$0]  (!%p1805_p8), %s1857_s16, 8192, %s1859_s12, %s261_s17, %s1715_s21, %s1715_s21, %s1716_s22  }
  0x43   : > { %284 = sbr.rel (%p1849_p3) target bundleno = 577 (0x241), region = 48  ;;  %s286_s19 = sand.u32 (!%p1849_p3), 1, %s1703_s25  }
  0x44   : > { %s1459_s20 = smul.u32 (!%p1849_p3), 104, %s286_s19  ;;  %s287_s18 = scalar_lea.sflag (!%p1849_p3), [#allocation3], %s286_s19 }
  0x45   : > { %p2073_p7 = scmp.ne.s32.totalorder (!%p1849_p3), %s2070_s10, 0 }
  0x46   : > { %s1893_s23 = scalar_lea.vmem (!%p1849_p3), [#allocation2], %s1459_s20 }
  0x4a   : > { %1690 = dma.done.wait (%p2073_p7), %s287_s18, 1664  }
  0x4b   : > { %1692 = vsyncadd (%p2073_p7), %s287_s18, 4294965632  ;;  %s1378_s11 = sshll.u32 %s286_s19, 9  ;;  %s296_s14 = scalar_lea.sflag [#allocation5], %s286_s19 }
  0x4c   : > { %s1899_s30 = scalar_lea.vmem [#allocation4], %s1378_s11 }
  0x4d   : > { %1694 = dma.done.wait (%p2073_p7), %s296_s14, 8192  }
  0x4e   : > { %1696 = vsyncadd (%p2073_p7), %s296_s14, 4294959104  ;;  %v1718_v0 = vmov 0   ;;  %v1511_v1 = vld [vmem:[%s1899_s30 + $0x4] ss:$8 sps:$4 sm:$0xff]   ;;  %v1515_v3 = vld [vmem:[%s1899_s30] ss:$8 sps:$4 sm:$0xff]   ;;  %v868_v40 = vlaneseq }
  0x4f   : > { %1509 = vset.pattern.permute.xlu0 %v1718_v0  ;;  %1510 = vset.pattern.permute.xlu1 %v1718_v0  ;;  %v1513_v2 = vld [vmem:[%s1899_s30 + $0x104] ss:$8 sps:$4 sm:$0xff]   ;;  %v1516_v4 = vld [vmem:[%s1899_s30 + $0x100] ss:$8 sps:$4 sm:$0xff]   ;;  %v1517_v5 = vld [vmem:[%s1899_s30 + $0x14] ss:$8 sps:$4 sm:$0xff]  }
  0x50   : > { %739 = vmatprep.subr.bf16.mxu1 %v1511_v1  ;;  %780 = vmatprep.subr.bf16.mxu0 %v1513_v2  ;;  %v1519_v6 = vld [vmem:[%s1899_s30 + $0x114] ss:$8 sps:$4 sm:$0xff]   ;;  %v1521_v7 = vld [vmem:[%s1899_s30 + $0x10] ss:$8 sps:$4 sm:$0xff]   ;;  %v1523_v9 = vld [vmem:[%s1899_s30 + $0x24] ss:$8 sps:$4 sm:$0xff]  }
  0x51   : > { %740 = vmatpush1.bf16.msra.mxu1 %v1515_v3  ;;  %781 = vmatpush1.bf16.msra.mxu0 %v1516_v4  ;;  %v1522_v8 = vld [vmem:[%s1899_s30 + $0x110] ss:$8 sps:$4 sm:$0xff]   ;;  %v1525_v10 = vld [vmem:[%s1899_s30 + $0x124] ss:$8 sps:$4 sm:$0xff]   ;;  %v1527_v11 = vld [vmem:[%s1899_s30 + $0x20] ss:$8 sps:$4 sm:$0xff]  }
  0x52   : > { %741 = vmatprep.subr.bf16.mxu1 %v1517_v5  ;;  %782 = vmatprep.subr.bf16.mxu0 %v1519_v6  ;;  %v1528_v12 = vld [vmem:[%s1899_s30 + $0x120] ss:$8 sps:$4 sm:$0xff]   ;;  %v1529_v13 = vld [vmem:[%s1899_s30 + $0x34] ss:$8 sps:$4 sm:$0xff]   ;;  %v1533_v15 = vld [vmem:[%s1899_s30 + $0x30] ss:$8 sps:$4 sm:$0xff]  }
  0x53   : > { %v1531_v14 = vld [vmem:[%s1899_s30 + $0x134] ss:$8 sps:$4 sm:$0xff]   ;;  %v1534_v16 = vld [vmem:[%s1899_s30 + $0x130] ss:$8 sps:$4 sm:$0xff]   ;;  %v1535_v17 = vld [vmem:[%s1899_s30 + $0x44] ss:$8 sps:$4 sm:$0xff]  }
  0x54   : > { %v1537_v18 = vld [vmem:[%s1899_s30 + $0x144] ss:$8 sps:$4 sm:$0xff]   ;;  %v1539_v19 = vld [vmem:[%s1899_s30 + $0x40] ss:$8 sps:$4 sm:$0xff]   ;;  %v1541_v21 = vld [vmem:[%s1899_s30 + $0x54] ss:$8 sps:$4 sm:$0xff]  }
  0x55   : > { %742 = vmatpush1.bf16.msra.mxu1 %v1521_v7  ;;  %783 = vmatpush1.bf16.msra.mxu0 %v1522_v8  ;;  %v1540_v20 = vld [vmem:[%s1899_s30 + $0x140] ss:$8 sps:$4 sm:$0xff]   ;;  %v1543_v22 = vld [vmem:[%s1899_s30 + $0x154] ss:$8 sps:$4 sm:$0xff]   ;;  %v1545_v23 = vld [vmem:[%s1899_s30 + $0x50] ss:$8 sps:$4 sm:$0xff]  }
  0x56   : > { %743 = vmatprep.subr.bf16.mxu1 %v1523_v9  ;;  %784 = vmatprep.subr.bf16.mxu0 %v1525_v10  ;;  %v1546_v24 = vld [vmem:[%s1899_s30 + $0x150] ss:$8 sps:$4 sm:$0xff]   ;;  %v1547_v25 = vld [vmem:[%s1899_s30 + $0x64] ss:$8 sps:$4 sm:$0xff]   ;;  %v1551_v27 = vld [vmem:[%s1899_s30 + $0x60] ss:$8 sps:$4 sm:$0xff]  }
  0x57   : > { %v1549_v26 = vld [vmem:[%s1899_s30 + $0x164] ss:$8 sps:$4 sm:$0xff]   ;;  %v1552_v28 = vld [vmem:[%s1899_s30 + $0x160] ss:$8 sps:$4 sm:$0xff]   ;;  %v1553_v29 = vld [vmem:[%s1899_s30 + $0x74] ss:$8 sps:$4 sm:$0xff]  }
  0x58   : > { %v1555_v30 = vld [vmem:[%s1899_s30 + $0x174] ss:$8 sps:$4 sm:$0xff]   ;;  %v1557_v31 = vld [vmem:[%s1899_s30 + $0x70] ss:$8 sps:$4 sm:$0xff]   ;;  %v1559_v33 = vld [vmem:[%s1899_s30 + $0x84] ss:$8 sps:$4 sm:$0xff]  }
  0x59   : > { %744 = vmatpush1.bf16.msra.mxu1 %v1527_v11  ;;  %785 = vmatpush1.bf16.msra.mxu0 %v1528_v12  ;;  %v1558_v32 = vld [vmem:[%s1899_s30 + $0x170] ss:$8 sps:$4 sm:$0xff]   ;;  %v1561_v34 = vld [vmem:[%s1899_s30 + $0x184] ss:$8 sps:$4 sm:$0xff]   ;;  %v1563_v35 = vld [vmem:[%s1899_s30 + $0x80] ss:$8 sps:$4 sm:$0xff]  }
  0x5a   : > { %745 = vmatprep.subr.bf16.mxu1 %v1529_v13  ;;  %786 = vmatprep.subr.bf16.mxu0 %v1531_v14  ;;  %v1564_v36 = vld [vmem:[%s1899_s30 + $0x180] ss:$8 sps:$4 sm:$0xff]   ;;  %v1565_v37 = vld [vmem:[%s1899_s30 + $0x94] ss:$8 sps:$4 sm:$0xff]   ;;  %v1719_v38 = vmov 1966171168  }
  0x5b   : > { %v866_v39 = vunpack.c.l.s4 %v1719_v38  ;;  %v1567_v41 = vld [vmem:[%s1899_s30 + $0x194] ss:$8 sps:$4 sm:$0xff]   ;;  %v1569_v42 = vld [vmem:[%s1899_s30 + $0x90] ss:$8 sps:$4 sm:$0xff]   ;;  %v1571_v44 = vld [vmem:[%s1899_s30 + $0xa4] ss:$8 sps:$4 sm:$0xff]  }
  0x5c   : > { %v1570_v43 = vld [vmem:[%s1899_s30 + $0x190] ss:$8 sps:$4 sm:$0xff]   ;;  %v869_v46 = vshrl.u32 %v868_v40, 7  ;;  %v1573_v47 = vld [vmem:[%s1899_s30 + $0x1a4] ss:$8 sps:$4 sm:$0xff]   ;;  %p335_p8 = scmp.lt.s32.totalorder %s1779_s28, 1 }
  0x5d   : > { %746 = vmatpush1.bf16.msra.mxu1 %v1533_v15  ;;  %787 = vmatpush1.bf16.msra.mxu0 %v1534_v16  ;;  %v867_v45 = vunpack.c.0.s8 %v866_v39  ;;  %v1575_v48 = vld [vmem:[%s1899_s30 + $0xa0] ss:$8 sps:$4 sm:$0xff]   ;;  %v1577_v50 = vld [vmem:[%s1899_s30 + $0xb4] ss:$8 sps:$4 sm:$0xff]   ;;  %v1581_v57 = vld [vmem:[%s1899_s30 + $0xb0] ss:$8 sps:$4 sm:$0xff]  }
  0x5e   : > { %747 = vmatprep.subr.bf16.mxu1 %v1535_v17  ;;  %788 = vmatprep.subr.bf16.mxu0 %v1537_v18  ;;  %v1576_v49 = vld [vmem:[%s1899_s30 + $0x1a0] ss:$8 sps:$4 sm:$0xff]   ;;  %v1579_v52 = vld [vmem:[%s1899_s30 + $0x1b4] ss:$8 sps:$4 sm:$0xff]   ;;  %v1582_v58 = vld [vmem:[%s1899_s30 + $0x1b0] ss:$8 sps:$4 sm:$0xff]  }
  0x5f   : > { %v1950_v51 = vsub.s32 %v867_v45, %v869_v46  ;;  %v1956_v53 = vld [vmem:[%s2063_s2] sm:$0xff]  ;;  %v1963_v55 = vld [vmem:[%s2063_s2 + $0x8] sm:$0xff]  ;;  %v1973_v61 = vsub.s32 0, %v869_v46  ;;  %v1583_v62 = vld [vmem:[%s1899_s30 + $0xc4] ss:$8 sps:$4 sm:$0xff]   ;;  %s2079_s28 = smov (!%p335_p8, %s1779_s28), 1 }
  0x60   : > { %v1381_v54 = vcombine.high %v1956_v53, %v1956_v53  ;;  %v860_v56 = vld [vmem:[%s2064_s3] sm:$0xff]  ;;  %v1383_v59 = vcombine.high %v1963_v55, %v1963_v55  ;;  %v1585_v63 = vld [vmem:[%s1899_s30 + $0x1c4] ss:$8 sps:$4 sm:$0xff]   ;;  %v1587_v4 = vld [vmem:[%s1899_s30 + $0xc0] ss:$8 sps:$4 sm:$0xff]   ;;  %s1379_s20 = sshll.u32 %s2079_s28, 3 }
  0x61   : > { %748 = vmatpush1.bf16.msra.mxu1 %v1539_v19  ;;  %789 = vmatpush1.bf16.msra.mxu0 %v1540_v20  ;;  %v871_v60 = vrot.slane %v860_v56, %v1950_v51  ;;  %v864_v0 = vcombine.high %v860_v56, %v860_v56  ;;  %v1588_v5 = vld [vmem:[%s1899_s30 + $0x1c0] ss:$8 sps:$4 sm:$0xff]   ;;  %v1589_v9 = vld [vmem:[%s1899_s30 + $0xd4] ss:$8 sps:$4 sm:$0xff]   ;;  %v1593_v17 = vld [vmem:[%s1899_s30 + $0xd0] ss:$8 sps:$4 sm:$0xff]  }
  0x62   : > { %749 = vmatprep.subr.bf16.mxu1 %v1541_v21  ;;  %790 = vmatprep.subr.bf16.mxu0 %v1543_v22  ;;  %v1591_v10 = vld [vmem:[%s1899_s30 + $0x1d4] ss:$8 sps:$4 sm:$0xff]   ;;  %v1594_v18 = vld [vmem:[%s1899_s30 + $0x1d0] ss:$8 sps:$4 sm:$0xff]   ;;  %v1595_v19 = vld [vmem:[%s1899_s30 + $0xe4] ss:$8 sps:$4 sm:$0xff]  }
  0x63   : > { %771 = vmatprep.mubr.bf16.mxu1 %v1381_v54  ;;  %812 = vmatprep.mubr.bf16.mxu0 %v1383_v59  ;;  %v887_v1 = vrot.slane %v871_v60, %v1950_v51  ;;  %v879_v2 = vcombine.high %v871_v60, %v871_v60  ;;  %v878_v3 = vrot.slane %v864_v0, %v1950_v51  ;;  %v861_v16 = vld [vmem:[%s2064_s3 + $0x8] sm:$0x1f]  ;;  %v1597_v20 = vld [vmem:[%s1899_s30 + $0x1e4] ss:$8 sps:$4 sm:$0xff]   ;;  %vm1278_vm0 = vcmask 15360  }
  0x64   : > { %v920_v22 = vrot.slane %v861_v16, %v1950_v51  ;;  %v823_v56 = vld [vmem:[%s1893_s23 + $0x10] sm:$0xff] }
  0x65   : > { %750 = vmatpush1.bf16.msra.mxu1 %v1545_v23  ;;  %791 = vmatpush1.bf16.msra.mxu0 %v1546_v24  ;;  %v955_v6 = vrot.slane %v887_v1, %v1973_v61  ;;  %v909_v7 = vcombine.high %v887_v1, %v887_v1  ;;  %v901_v8 = vrot.slane %v879_v2, %v1950_v51  ;;  %v824_v1 = vld [vmem:[%s1893_s23 + $0x18] sm:$0xff] }
  0x66   : > { %751 = vmatprep.subr.bf16.mxu1 %v1547_v25  ;;  %792 = vmatprep.subr.bf16.mxu0 %v1549_v26  ;;  %v894_v11 = vrot.slane %v878_v3, %v1950_v51  ;;  %v880_v15 = vcombine.high %v878_v3, %v878_v3  ;;  %v1599_v26 = vld [vmem:[%s1899_s30 + $0xe0] ss:$8 sps:$4 sm:$0xff]  }
  0x67   : > { %1005 = vperm.xlu0 %1509, %v955_v6   ;;  %v963_v12 = vrot.slane %v909_v7, %v1973_v61  ;;  %v959_v13 = vrot.slane %v901_v8, %v1973_v61  ;;  %v911_v14 = vcombine.high %v901_v8, %v901_v8  ;;  %v840_v7 = vunpack.c.l.bf16 %v824_v1 }
  0x68   : > { %v971_v21 = vrot.slane %v894_v11, %v1973_v61  ;;  %v908_v24 = vrot.slane %v880_v15, %v1950_v51  ;;  %v910_v25 = vcombine.high %v894_v11, %v894_v11  ;;  %v841_v8 = vunpack.c.h.bf16 %v824_v1 }
  0x69   : > { %752 = vmatpush1.bf16.msra.mxu1 %v1551_v27  ;;  %793 = vmatpush1.bf16.msra.mxu0 %v1552_v28  ;;  %v967_v23 = vrot.slane %v911_v14, %v1973_v61  ;;  %v1600_v27 = vld [vmem:[%s1899_s30 + $0x1e0] ss:$8 sps:$4 sm:$0xff]   ;;  %v1601_v28 = vld [vmem:[%s1899_s30 + $0xf4] ss:$8 sps:$4 sm:$0xff]  }
  0x6a   : > { %753 = vmatprep.subr.bf16.mxu1 %v1553_v29  ;;  %794 = vmatprep.subr.bf16.mxu0 %v1555_v30  ;;  %v1603_v29 = vld [vmem:[%s1899_s30 + $0x1f4] ss:$8 sps:$4 sm:$0xff]   ;;  %v935_v30 = vrot.slane %v920_v22, %v1950_v51 }
  0x6b   : > { %1013 = vperm.xlu1 %1510, %v963_v12   ;;  %1009 = vperm.xlu0 %1509, %v959_v13   ;;  %v826_v13 = vld [vmem:[%s1893_s23 + $0x28] sm:$0xff] }
  0x6d   : > { %754 = vmatpush1.bf16.msra.mxu1 %v1557_v31  ;;  %795 = vmatpush1.bf16.msra.mxu0 %v1558_v32  ;;  %v928_v31 = vcombine.high %v920_v22, %v920_v22  ;;  %v913_v32 = vcombine.high %v861_v16, %v861_v16  ;;  %v845_v22 = vunpack.c.h.bf16 %v826_v13 }
  0x6e   : > { %755 = vmatprep.subr.bf16.mxu1 %v1559_v33  ;;  %796 = vmatprep.subr.bf16.mxu0 %v1561_v34  ;;  %v975_v33 = vrot.slane %v908_v24, %v1973_v61  ;;  %v979_v34 = vrot.slane %v910_v25, %v1973_v61 }
  0x6f   : > { %1017 = vperm.xlu1 %1510, %v967_v23   ;;  %1021 = vperm.xlu0 %1509, %v971_v21   ;;  %v949_v38 = vrot.slane %v928_v31, %v1950_v51  ;;  %v927_v39 = vrot.slane %v913_v32, %v1950_v51  ;;  %v844_v21 = vunpack.c.l.bf16 %v826_v13 }
  0x71   : > { %756 = vmatpush1.bf16.msra.mxu1 %v1563_v35  ;;  %797 = vmatpush1.bf16.msra.mxu0 %v1564_v36  ;;  %v912_v35 = vcombine.high %v908_v24, %v908_v24  ;;  %v1605_v36 = vld [vmem:[%s1899_s30 + $0xf0] ss:$8 sps:$4 sm:$0xff]   ;;  %v991_v45 = vrot.slane %v949_v38, %v1973_v61 }
  0x72   : > { %757 = vmatprep.subr.bf16.mxu1 %v1565_v37  ;;  %798 = vmatprep.subr.bf16.mxu0 %v1567_v41  ;;  %v1606_v37 = vld [vmem:[%s1899_s30 + $0x1f0] ss:$8 sps:$4 sm:$0xff]   ;;  %v987_v41 = vrot.slane %v935_v30, %v1973_v61  ;;  %s338_s30 = scalar_lea.vmem %s2068_s7, %s1379_s20 }
  0x73   : > { %1025 = vperm.xlu1 %1510, %v975_v33   ;;  %1029 = vperm.xlu0 %1509, %v979_v34   ;;  %v983_v40 = vrot.slane %v912_v35, %v1973_v61  ;;  %v829_v34 = vld [vmem:[%s1893_s23 + $0x40] sm:$0xff] }
  0x75   : > { %758 = vmatpush1.bf16.msra.mxu1 %v1569_v42  ;;  %799 = vmatpush1.bf16.msra.mxu0 %v1570_v43  ;;  %v950_v42 = vcombine.high %v935_v30, %v935_v30  ;;  %v1380_v43 = vcombine.low %v1956_v53, %v1956_v53 }
  0x76   : > { %759 = vmatprep.subr.bf16.mxu1 %v1571_v44  ;;  %800 = vmatprep.subr.bf16.mxu0 %v1573_v47  ;;  %v1382_v44 = vcombine.low %v1963_v55, %v1963_v55  ;;  %v951_v47 = vcombine.high %v949_v38, %v949_v38  ;;  %v821_v55 = vld [vmem:[%s1893_s23] sm:$0xff] }
  0x77   : > { %1033 = vperm.xlu1 %1510, %v983_v40   ;;  %1037 = vperm.xlu0 %1509, %v987_v41   ;;  %v995_v46 = vrot.slane %v950_v42, %v1973_v61  ;;  %v835_v59 = vunpack.c.h.bf16 %v821_v55 }
  0x79   : > { %760 = vmatpush1.bf16.msra.mxu1 %v1575_v48  ;;  %801 = vmatpush1.bf16.msra.mxu0 %v1576_v49  ;;  %v942_v48 = vrot.slane %v927_v39, %v1950_v51  ;;  %v999_v49 = vrot.slane %v951_v47, %v1973_v61  ;;  %v1448_v51 = vld.sshfl [vmem:[%s2066_s5] sm:$0x33 pattern:$0x76325410]  ;;  %v851_v47 = vunpack.c.h.bf16 %v829_v34 }
  0x7a   : > { %761 = vmatprep.subr.bf16.mxu1 %v1577_v50  ;;  %802 = vmatprep.subr.bf16.mxu0 %v1579_v52  ;;  %v1449_v52 = vld.sshfl [vmem:[%s2065_s4] sm:$0x33 pattern:$0x76325410]  ;;  %v1116_v54 = vcombine.high %v1448_v51, %v1448_v51 }
  0x7b   : > { %1041 = vperm.xlu1 %1510, %v991_v45   ;;  %1045 = vperm.xlu0 %1509, %v995_v46   ;;  %v1003_v50 = vrot.slane %v942_v48, %v1973_v61  ;;  %v1197_v53 = vcombine.high %v1449_v52, %v1449_v52  ;;  %v838_v61 = vunpack.c.l.bf16 %v823_v56  ;;  %v850_v46 = vunpack.c.l.bf16 %v829_v34 }
  0x7d   : > { %762 = vmatpush1.bf16.msra.mxu1 %v1581_v57  ;;  %803 = vmatpush1.bf16.msra.mxu0 %v1582_v58  ;;  %v822_v57 = vld [vmem:[%s1893_s23 + $0x8] sm:$0xff]  ;;  %v834_v58 = vunpack.c.l.bf16 %v821_v55 }
  0x7e   : > { %763 = vmatprep.subr.bf16.mxu1 %v1583_v62  ;;  %804 = vmatprep.subr.bf16.mxu0 %v1585_v63  ;;  %v839_v62 = vunpack.c.h.bf16 %v823_v56  ;;  %v836_v63 = vunpack.c.l.bf16 %v822_v57  ;;  %v837_v0 = vunpack.c.h.bf16 %v822_v57 }
  0x7f   : > { %1049 = vperm.xlu1 %1510, %v999_v49   ;;  %1053 = vperm.xlu0 %1509, %v1003_v50   ;;  %v831_v50 = vld [vmem:[%s1893_s23 + $0x50] sm:$0xff] }
  0x81   : > { %764 = vmatpush1.bf16.msra.mxu1 %v1587_v4  ;;  %805 = vmatpush1.bf16.msra.mxu0 %v1588_v5  ;;  %v825_v4 = vld [vmem:[%s1893_s23 + $0x20] sm:$0xff] }
  0x82   : > { %765 = vmatprep.subr.bf16.mxu1 %v1589_v9  ;;  %806 = vmatprep.subr.bf16.mxu0 %v1591_v10  ;;  %v842_v14 = vunpack.c.l.bf16 %v825_v4  ;;  %v843_v15 = vunpack.c.h.bf16 %v825_v4 }
  0x85   : > { %766 = vmatpush1.bf16.msra.mxu1 %v1593_v17  ;;  %807 = vmatpush1.bf16.msra.mxu0 %v1594_v18  ;;  %v827_v18 = vld [vmem:[%s1893_s23 + $0x30] sm:$0xff] }
  0x86   : > { %767 = vmatprep.subr.bf16.mxu1 %v1595_v19  ;;  %808 = vmatprep.subr.bf16.mxu0 %v1597_v20  ;;  %v846_v30 = vunpack.c.l.bf16 %v827_v18  ;;  %v847_v31 = vunpack.c.h.bf16 %v827_v18 }
  0x89   : > { %768 = vmatpush1.bf16.msra.mxu1 %v1599_v26  ;;  %809 = vmatpush1.bf16.msra.mxu0 %v1600_v27  ;;  %v828_v27 = vld [vmem:[%s1893_s23 + $0x38] sm:$0xff] }
  0x8a   : > { %769 = vmatprep.subr.bf16.mxu1 %v1601_v28  ;;  %810 = vmatprep.subr.bf16.mxu0 %v1603_v29  ;;  %v849_v38 = vunpack.c.h.bf16 %v828_v27 }
  0x8d   : > { %770 = vmatpush1.bf16.msra.mxu1 %v1605_v36  ;;  %811 = vmatpush1.bf16.msra.mxu0 %v1606_v37  ;;  %v848_v37 = vunpack.c.l.bf16 %v828_v27 }
  0x8e   : > { %1200 = vmatprep.subr.mxu1 %v1197_v53  ;;  %1119 = vmatprep.subr.mxu0 %v1116_v54 }
  0x90   : > { %772 = vmatmul.mubr.bf16.vlgmr.msra.gmra.mrb[0].mxu1 %v1380_v43  ;;  %813 = vmatmul.mubr.bf16.vlgmr.msra.gmra.mrb[0].mxu0 %v1382_v44  ;;  %v830_v43 = vld [vmem:[%s1893_s23 + $0x48] sm:$0xff] }
  0x91   : > { %v853_v54 = vunpack.c.h.bf16 %v830_v43 }
  0x96   : > { %1201 = vmatpush1.xpose.msra.mxu1 %v1449_v52  ;;  %1120 = vmatpush1.xpose.msra.mxu0 %v1448_v51  ;;  %v852_v51 = vunpack.c.l.bf16 %v830_v43 }
  0xe6   : > { %v1006_v60 = vpop.permute.xlu0 %1005 }
  0xe7   : > { %v1056_v2 = vmul.f32 %v1006_v60, %v834_v58  ;;  %v1057_v3 = vmul.f32 %v1006_v60, %v835_v59  ;;  %v832_v59 = vld [vmem:[%s1893_s23 + $0x58] sm:$0xff] }
  0xea   : > { %v1014_v5 = vpop.permute.xlu1 %1013  ;;  %v1010_v6 = vpop.permute.xlu0 %1009 }
  0xeb   : > { %v1060_v9 = vmul.f32 %v1014_v5, %v838_v61  ;;  %v1061_v10 = vmul.f32 %v1014_v5, %v839_v62  ;;  %v1058_v11 = vmul.f32 %v1010_v6, %v836_v63  ;;  %v1059_v12 = vmul.f32 %v1010_v6, %v837_v0 }
  0xec   : > { %v854_v62 = vunpack.c.l.bf16 %v831_v50  ;;  %v855_v63 = vunpack.c.h.bf16 %v831_v50  ;;  %v856_v5 = vunpack.c.l.bf16 %v832_v59  ;;  %v857_v6 = vunpack.c.h.bf16 %v832_v59 }
  0xed   : > { %v1082_v16 = vadd.f32 %v1058_v11, %v1056_v2  ;;  %v1094_v17 = vadd.f32 %v1059_v12, %v1057_v3  ;;  %v833_v2 = vld [vmem:[%s1893_s23 + $0x60] sm:$0xff] }
  0xee   : > { %v1018_v19 = vpop.permute.xlu1 %1017  ;;  %v1022_v20 = vpop.permute.xlu0 %1021  ;;  %v858_v13 = vunpack.c.l.bf16 %v833_v2 }
  0xef   : > { %v1062_v23 = vmul.f32 %v1018_v19, %v840_v7  ;;  %v1063_v24 = vmul.f32 %v1018_v19, %v841_v8  ;;  %v1083_v25 = vadd.f32 %v1082_v16, %v1060_v9  ;;  %v1095_v26 = vadd.f32 %v1094_v17, %v1061_v10 }
  0xf0   : > { %v1064_v28 = vmul.f32 %v1022_v20, %v842_v14  ;;  %v1065_v29 = vmul.f32 %v1022_v20, %v843_v15  ;;  %v859_v14 = vunpack.c.h.bf16 %v833_v2 }
  0xf1   : > { %v1084_v32 = vadd.f32 %v1083_v25, %v1062_v23  ;;  %v1096_v33 = vadd.f32 %v1095_v26, %v1063_v24 }
  0xf2   : > { %v1026_v35 = vpop.permute.xlu1 %1025  ;;  %v1030_v36 = vpop.permute.xlu0 %1029 }
  0xf3   : > { %v1085_v39 = vadd.f32 %v1084_v32, %v1064_v28  ;;  %v1097_v40 = vadd.f32 %v1096_v33, %v1065_v29  ;;  %v1066_v41 = vmul.f32 %v1026_v35, %v844_v21  ;;  %v1067_v42 = vmul.f32 %v1026_v35, %v845_v22 }
  0xf4   : > { %v1068_v44 = vmul.f32 %v1030_v36, %v846_v30  ;;  %v1069_v45 = vmul.f32 %v1030_v36, %v847_v31 }
  0xf5   : > { %v1086_v48 = vadd.f32 %v1085_v39, %v1066_v41  ;;  %v1098_v49 = vadd.f32 %v1097_v40, %v1067_v42  ;;  %v1450_v42 = vld [vmem:[%s2067_s6] ss:$0 sm:$0xff] }
  0xf6   : > { %v1034_v52 = vpop.permute.xlu1 %1033  ;;  %v1038_v53 = vpop.permute.xlu0 %1037 }
  0xf7   : > { %v1087_v55 = vadd.f32 %v1086_v48, %v1068_v44  ;;  %v1099_v56 = vadd.f32 %v1098_v49, %v1069_v45  ;;  %v1070_v57 = vmul.f32 %v1034_v52, %v848_v37  ;;  %v1071_v58 = vmul.f32 %v1034_v52, %v849_v38 }
  0xf8   : > { %v1072_v60 = vmul.f32 %v1038_v53, %v850_v46  ;;  %v1073_v61 = vmul.f32 %v1038_v53, %v851_v47 }
  0xf9   : > { %v1088_v0 = vadd.f32 %v1087_v55, %v1070_v57  ;;  %v1100_v1 = vadd.f32 %v1099_v56, %v1071_v58 }
  0xfa   : > { %v1042_v3 = vpop.permute.xlu1 %1041  ;;  %v1046_v4 = vpop.permute.xlu0 %1045 }
  0xfb   : > { %v1089_v7 = vadd.f32 %v1088_v0, %v1072_v60  ;;  %v1101_v8 = vadd.f32 %v1100_v1, %v1073_v61  ;;  %v1074_v9 = vmul.f32 %v1042_v3, %v852_v51  ;;  %v1075_v10 = vmul.f32 %v1042_v3, %v853_v54 }
  0xfc   : > { %v1076_v11 = vmul.f32 %v1046_v4, %v854_v62  ;;  %v1077_v12 = vmul.f32 %v1046_v4, %v855_v63 }
  0xfd   : > { %v1090_v15 = vadd.f32 %v1089_v7, %v1074_v9  ;;  %v1102_v16 = vadd.f32 %v1101_v8, %v1075_v10 }
  0xfe   : > { %v1050_v17 = vpop.permute.xlu1 %1049  ;;  %v1054_v18 = vpop.permute.xlu0 %1053 }
  0xff   : > { %v1091_v19 = vadd.f32 %v1090_v15, %v1076_v11  ;;  %v1103_v20 = vadd.f32 %v1102_v16, %v1077_v12  ;;  %v1078_v21 = vmul.f32 %v1050_v17, %v856_v5  ;;  %v1079_v22 = vmul.f32 %v1050_v17, %v857_v6 }
 0x100   : > { %v1080_v23 = vmul.f32 %v1054_v18, %v858_v13  ;;  %v1081_v24 = vmul.f32 %v1054_v18, %v859_v14 }
 0x101   : > { %v1092_v25 = vadd.f32 %v1091_v19, %v1078_v21  ;;  %v1104_v26 = vadd.f32 %v1103_v20, %v1079_v22 }
 0x103   : > { %v1093_v27 = vadd.f32 %v1092_v25, %v1080_v23  ;;  %v1105_v28 = vadd.f32 %v1104_v26, %v1081_v24 }
 0x105   : > { %1264 = vmatprep.mubr.f32.mxu1 %v1105_v28 }
 0x106   : > { %1265 = vmatmul.mubr.f32.vlgmr.msra.gmra.mrb[4].mxu1 %v1093_v27 }
 0x163   : > { %v773_v29 = vpop.f32.mrb[0].mxu1  ;;  %v814_v30 = vpop.f32.mrb[0].mxu0 }
 0x164   : > { %v815_v31 = vadd.f32 %v814_v30, %v773_v29  ;;  %v775_v32 = vpop.f32.mrb[1].mxu1  ;;  %v816_v33 = vpop.f32.mrb[1].mxu0 }
 0x165   : > { %v817_v34 = vadd.f32 %v816_v33, %v775_v32  ;;  %v777_v35 = vpop.f32.mrb[2].mxu1  ;;  %v818_v36 = vpop.f32.mrb[2].mxu0 }
 0x166   : > { %v778_v37 = vpop.f32.mrb[3].mxu1  ;;  %v819_v38 = vpop.f32.mrb[3].mxu0 }
 0x167   : > { %1183 = vmatprep.mubr.f32.mxu0 %v817_v34 }
 0x168   : > { %1184 = vmatmul.mubr.f32.vlgmr.msra.gmra.mrb[4].mxu0 %v815_v31 }
 0x1d9   : > { %v1266_v39 = vpop.f32.mrb[4].mxu1 }
 0x1da   : > { %v1268_v40 = vpop.f32.mrb[5].mxu1 }
 0x23b   : > { %v1185_v41 = vpop.f32.mrb[4].mxu0 }
 0x23c   : > { %v1267_v43 = vadd.f32 %v1266_v39, %v1185_v41  ;;  %v1187_v44 = vpop.f32.mrb[5].mxu0 }
 0x23e   : > { %v1277_v45 = vadd.f32 %v1450_v42, %v1267_v43 }
 0x240   : > { %1279 = vst.msk [vmem:[%s338_s30] sm:$0xff] %vm1278_vm0, %v1277_v45 }
 0x241 PF: > { %p20_p10 = scmp.ge.s32.totalorder %s1782_s29, 4   ;;  %s2074_s24 = smov %s1703_s25 }
 0x242   : > { %s2075_s25 = smov %s1707_s26  ;;  %s2076_s26 = smov %s1792_s9 }
 0x243   : > { %s2077_s27 = smov %s1782_s29  ;;  %22 = sbr.rel (!%p20_p10) target bundleno = 5 (0x5), region = 101 }
 0x24a   :  { %1299 = vsyncpa [#allocation3], 1 }
 0x24b   :  { %1301 = vsyncpa [#allocation3 + $0x1], 1 }
 0x24c   :  { %1302 = vsyncpa [#allocation5], 1 }
 0x24d   :  { %1304 = vsyncpa [#allocation5 + $0x1], 1 }

</bundles_post_ra>
